<compile_context>
chip_gen: v6e
topology: v6e:2x2x1
jax: 0.10.0
libtpu: 0.0.40
codegen_flags: <defaults>
</compile_context>

<pallas_src>
import functools

import jax
import jax.numpy as jnp
from jax.experimental import pallas as pl
from jax.experimental.pallas import tpu as pltpu


# ---------------------------------------------------------------------------
# Kernels. `mxu_dtype` is bound via functools.partial (static Python value);
# when set, the matmul operands are cast for the MXU while the accumulator and
# the epilogue stay in f32.
# ---------------------------------------------------------------------------
def _dot(x_ref, w_ref, mxu_dtype):
    x = x_ref[...]
    w = w_ref[...]
    if mxu_dtype is not None:
        x = x.astype(mxu_dtype)
        w = w.astype(mxu_dtype)
    return jnp.dot(x, w, preferred_element_type=jnp.float32)


def _kernel_gated_kc(mxu_dtype, x_ref, w_ref, b_ref, g_ref, r_ref, o_ref):
    # K collapsed: one dot per (b, s, n) tile, un-predicated epilogue.
    acc = _dot(x_ref, w_ref, mxu_dtype) + b_ref[...].astype(jnp.float32)
    o_ref[...] = (g_ref[...].astype(jnp.float32) * acc
                  + r_ref[...].astype(jnp.float32)).astype(o_ref.dtype)


def _kernel_plain_kc(mxu_dtype, x_ref, w_ref, b_ref, r_ref, o_ref):
    acc = _dot(x_ref, w_ref, mxu_dtype) + b_ref[...].astype(jnp.float32)
    o_ref[...] = (acc + r_ref[...].astype(jnp.float32)).astype(o_ref.dtype)


def _kernel_gated_kt(mxu_dtype, x_ref, w_ref, b_ref, g_ref, r_ref, o_ref, acc_ref):
    k = pl.program_id(3)

    @pl.when(k == 0)
    def _():
        acc_ref[...] = jnp.zeros_like(acc_ref)

    acc_ref[...] += _dot(x_ref, w_ref, mxu_dtype)

    @pl.when(k == pl.num_programs(3) - 1)
    def _():
        out = acc_ref[...] + b_ref[...].astype(jnp.float32)
        o_ref[...] = (g_ref[...].astype(jnp.float32) * out
                      + r_ref[...].astype(jnp.float32)).astype(o_ref.dtype)


def _kernel_plain_kt(mxu_dtype, x_ref, w_ref, b_ref, r_ref, o_ref, acc_ref):
    k = pl.program_id(3)

    @pl.when(k == 0)
    def _():
        acc_ref[...] = jnp.zeros_like(acc_ref)

    acc_ref[...] += _dot(x_ref, w_ref, mxu_dtype)

    @pl.when(k == pl.num_programs(3) - 1)
    def _():
        out = acc_ref[...] + b_ref[...].astype(jnp.float32)
        o_ref[...] = (out + r_ref[...].astype(jnp.float32)).astype(o_ref.dtype)


# ---------------------------------------------------------------------------
# Wrapper.
# ---------------------------------------------------------------------------
def agfm_self_output(hidden_states, input_tensor, weight, bias, gate=None, *,
                     ts=256, tn=512, tk=1024, collapse_k_max=4096,
                     mxu_dtype=None, grid_order=None):
    """Fused dense + optional gate + residual (AGFMSelfOutput forward, eval).

    hidden_states, input_tensor: [B, S, H]; gate: [B, H] or None.
    weight: [H_in, H_out]; bias: [H_out].
    """
    B, S, H = hidden_states.shape
    out_dtype = hidden_states.dtype
    gated = gate is not None

    # --- tile sizes ---------------------------------------------------------
    # Seq tile: multiple of 8 (or full S). Ragged last tile is fine: padded
    # rows only produce output rows that are dropped on writeback.
    ts_eff = S if S <= ts else max(8, (ts // 8) * 8)
    s_t = pl.cdiv(S, ts_eff)

    # Output-column tile: multiple of 128 (or full H). Ragged last N tile is
    # fine (lane-masked stores); avoids the full-H VMEM-blowup fallback.
    tn_eff = H if H <= tn else max(128, (tn // 128) * 128)
    n_t = pl.cdiv(H, tn_eff)

    # K tile: must divide H exactly (ragged K would corrupt the reduction) and
    # be a 128-multiple; otherwise collapse K to full H (single dot).
    tk_eff = H
    if H > collapse_k_max:
        best = None
        cand = 128
        while cand <= min(tk, H):
            if H % cand == 0:
                best = cand
            cand += 128
        if best is not None:
            tk_eff = best
    k_t = H // tk_eff

    # --- grid ordering: keep the operand whose re-streaming would cost more
    # resident across the inner loop ------------------------------------------
    x_itemsize = jnp.dtype(hidden_states.dtype).itemsize
    w_itemsize = jnp.dtype(weight.dtype).itemsize
    m_blocks = B * s_t
    w_restream = (m_blocks - 1) * H * H * w_itemsize   # extra traffic if m-outer
    x_restream = (n_t - 1) * B * S * H * x_itemsize    # extra traffic if n-outer
    if grid_order is None:
        grid_order = "m_outer" if w_restream <= x_restream else "n_outer"

    if grid_order == "m_outer":
        if k_t == 1:
            grid = (B, s_t, n_t)
            x_map = lambda b, s, n: (b, s, 0)
            w_map = lambda b, s, n: (0, n)
            bias_map = lambda b, s, n: (0, n)
            gate_map = lambda b, s, n: (b, 0, n)
            res_map = lambda b, s, n: (b, s, n)
        else:
            grid = (B, s_t, n_t, k_t)
            x_map = lambda b, s, n, k: (b, s, k)
            w_map = lambda b, s, n, k: (k, n)
            bias_map = lambda b, s, n, k: (0, n)
            gate_map = lambda b, s, n, k: (b, 0, n)
            res_map = lambda b, s, n, k: (b, s, n)
    else:  # n_outer: weight column stays resident, streamed from HBM once
        if k_t == 1:
            grid = (n_t, B, s_t)
            x_map = lambda n, b, s: (b, s, 0)
            w_map = lambda n, b, s: (0, n)
            bias_map = lambda n, b, s: (0, n)
            gate_map = lambda n, b, s: (b, 0, n)
            res_map = lambda n, b, s: (b, s, n)
        else:
            grid = (n_t, B, s_t, k_t)
            x_map = lambda n, b, s, k: (b, s, k)
            w_map = lambda n, b, s, k: (k, n)
            bias_map = lambda n, b, s, k: (0, n)
            gate_map = lambda n, b, s, k: (b, 0, n)
            res_map = lambda n, b, s, k: (b, s, n)

    dim_sem = ("parallel",) * 3 + (("arbitrary",) if k_t > 1 else ())

    x_spec = pl.BlockSpec((None, ts_eff, tk_eff), x_map)
    w_spec = pl.BlockSpec((tk_eff, tn_eff), w_map)
    b_spec = pl.BlockSpec((1, tn_eff), bias_map)
    g_spec = pl.BlockSpec((None, 1, tn_eff), gate_map)
    r_spec = pl.BlockSpec((None, ts_eff, tn_eff), res_map)
    o_spec = pl.BlockSpec((None, ts_eff, tn_eff), res_map)

    in_specs = [x_spec, w_spec, b_spec]
    args = [hidden_states, weight, bias.reshape(1, H)]
    if gated:
        in_specs.append(g_spec)
        args.append(gate.reshape(B, 1, H))   # metadata-only reshape, no broadcast
    in_specs.append(r_spec)
    args.append(input_tensor)

    scratch = []
    if k_t > 1:
        scratch.append(pltpu.VMEM((ts_eff, tn_eff), jnp.float32))
        kernel = _kernel_gated_kt if gated else _kernel_plain_kt
    else:
        kernel = _kernel_gated_kc if gated else _kernel_plain_kc
    kernel = functools.partial(kernel, mxu_dtype)

    # --- VMEM budget: double-buffered working set + headroom -----------------
    def _bytes(shape, dtype):
        n = 1
        for d in shape:
            n *= d
        return n * jnp.dtype(dtype).itemsize

    ws = 2 * (_bytes((ts_eff, tk_eff), hidden_states.dtype)
              + _bytes((tk_eff, tn_eff), weight.dtype)
              + _bytes((1, tn_eff), bias.dtype)
              + _bytes((ts_eff, tn_eff), input_tensor.dtype)
              + _bytes((ts_eff, tn_eff), out_dtype))
    if gated:
        ws += 2 * _bytes((1, tn_eff), gate.dtype)
    if k_t > 1:
        ws += _bytes((ts_eff, tn_eff), jnp.float32)
    vmem_limit = int(min(64 * 1024 * 1024, max(32 * 1024 * 1024, (ws * 3) // 2)))

    # --- advisory cost estimate (ideal traffic) ------------------------------
    ideal_bytes = (_bytes((B, S, H), hidden_states.dtype)
                   + _bytes((H, H), weight.dtype)
                   + _bytes((H,), bias.dtype)
                   + _bytes((B, S, H), input_tensor.dtype)
                   + _bytes((B, S, H), out_dtype))
    if gated:
        ideal_bytes += _bytes((B, H), gate.dtype)
    cost = pl.CostEstimate(flops=2 * B * S * H * H, transcendentals=0,
                           bytes_accessed=int(ideal_bytes))

    return pl.pallas_call(
        kernel,
        out_shape=jax.ShapeDtypeStruct((B, S, H), out_dtype),
        grid_spec=pltpu.PrefetchScalarGridSpec(
            num_scalar_prefetch=0,
            grid=grid,
            in_specs=in_specs,
            out_specs=o_spec,
            scratch_shapes=scratch),
        compiler_params=pltpu.CompilerParams(
            dimension_semantics=dim_sem,
            vmem_limit_bytes=vmem_limit),
        cost_estimate=cost,
    )(*args)


def _reference(hidden_states, input_tensor, weight, bias, gate=None):
    x = jnp.einsum("bsh,ho->bso", hidden_states, weight) + bias
    if gate is not None:
        return gate[:, None, :] * x + input_tensor
    return x + input_tensor


if __name__ == "__main__":
    key = jax.random.PRNGKey(0)

    # --- small shapes matching the module (B=2, S=16, H=32) -----------------
    B, S, H = 2, 16, 32
    k1, k2, k3, k4, k5 = jax.random.split(key, 5)
    hidden_states = jax.random.normal(k1, (B, S, H), dtype=jnp.float32)
    input_tensor = jax.random.normal(k2, (B, S, H), dtype=jnp.float32)
    gate = jax.random.normal(k3, (B, H), dtype=jnp.float32)
    weight = jax.random.normal(k4, (H, H), dtype=jnp.float32) * 0.02  # (in, out)
    bias = jax.random.normal(k5, (H,), dtype=jnp.float32) * 0.02

    out_gated = jax.block_until_ready(
        agfm_self_output(hidden_states, input_tensor, weight, bias, gate))
    ref_gated = _reference(hidden_states, input_tensor, weight, bias, gate)
    assert jnp.allclose(out_gated, ref_gated, atol=1e-5, rtol=1e-5)

    out_plain = jax.block_until_ready(
        agfm_self_output(hidden_states, input_tensor, weight, bias, None))
    ref_plain = _reference(hidden_states, input_tensor, weight, bias, None)
    assert jnp.allclose(out_plain, ref_plain, atol=1e-5, rtol=1e-5)

    # --- ragged seq tile + tiled-K accumulator path + forced m-outer order ---
    B2, S2, H2 = 2, 40, 256
    j1, j2, j3, j4, j5 = jax.random.split(jax.random.PRNGKey(1), 5)
    hs2 = jax.random.normal(j1, (B2, S2, H2), dtype=jnp.float32)
    in2 = jax.random.normal(j2, (B2, S2, H2), dtype=jnp.float32)
    g2 = jax.random.normal(j3, (B2, H2), dtype=jnp.float32)
    w2 = jax.random.normal(j4, (H2, H2), dtype=jnp.float32) * 0.02
    b2 = jax.random.normal(j5, (H2,), dtype=jnp.float32) * 0.02

    ref2 = _reference(hs2, in2, w2, b2, g2)
    out2 = jax.block_until_ready(
        agfm_self_output(hs2, in2, w2, b2, g2, ts=32, tn=128, tk=128,
                         collapse_k_max=0, grid_order="m_outer"))
    assert jnp.allclose(out2, ref2, atol=2e-3, rtol=2e-3)

    # --- no-gate path, auto ordering / collapsed K ---------------------------
    ref3 = _reference(hs2, in2, w2, b2, None)
    out3 = jax.block_until_ready(agfm_self_output(hs2, in2, w2, b2, None))
    assert jnp.allclose(out3, ref3, atol=2e-3, rtol=2e-3)

    # --- bf16 MXU operands (f32 accumulate / epilogue), looser tolerance -----
    out4 = jax.block_until_ready(
        agfm_self_output(hs2, in2, w2, b2, g2, mxu_dtype=jnp.bfloat16))
    assert jnp.allclose(out4, ref2, atol=3e-2, rtol=3e-2)

    print("KERNEL_OK")
</pallas_src>

<mosaic_0001>
module attributes {stable_mosaic.version = 11 : i64} {
  func.func @_kernel_gated_kc(%arg0: i32, %arg1: i32, %arg2: i32, %arg3: memref<1x16x32xf32, #tpu.memory_space<vmem>>, %arg4: memref<32x32xf32, #tpu.memory_space<vmem>>, %arg5: memref<1x32xf32, #tpu.memory_space<vmem>>, %arg6: memref<1x1x32xf32, #tpu.memory_space<vmem>>, %arg7: memref<1x16x32xf32, #tpu.memory_space<vmem>>, %arg8: memref<1x16x32xf32, #tpu.memory_space<vmem>>) attributes {dimension_semantics = [#tpu.dimension_semantics<parallel>, #tpu.dimension_semantics<parallel>, #tpu.dimension_semantics<parallel>], iteration_bounds = array<i64: 1, 2, 1>, scalar_prefetch = 0 : i64, scratch_operands = 0 : i64, tpu.core_type = #tpu.core_type<tc>, window_params = [{transform_indices = @transform_0, window_bounds = array<i64: 1, 16, 32>}, {transform_indices = @transform_1, window_bounds = array<i64: 32, 32>}, {transform_indices = @transform_2, window_bounds = array<i64: 1, 32>}, {transform_indices = @transform_3, window_bounds = array<i64: 1, 1, 32>}, {transform_indices = @transform_4, window_bounds = array<i64: 1, 16, 32>}, {transform_indices = @transform_5, window_bounds = array<i64: 1, 16, 32>}]} {
    %c0 = arith.constant 0 : index
    %c0_0 = arith.constant 0 : index
    %c0_1 = arith.constant 0 : index
    %0 = vector.load %arg3[%c0, %c0_0, %c0_1] : memref<1x16x32xf32, #tpu.memory_space<vmem>>, vector<1x16x32xf32>
    %1 = vector.shape_cast %0 : vector<1x16x32xf32> to vector<16x32xf32>
    %c0_2 = arith.constant 0 : index
    %c0_3 = arith.constant 0 : index
    %2 = vector.load %arg4[%c0_2, %c0_3] : memref<32x32xf32, #tpu.memory_space<vmem>>, vector<32x32xf32>
    %cst = arith.constant dense<0.000000e+00> : vector<16x32xf32>
    %3 = tpu.matmul %1, %2, %cst {dimension_numbers = #tpu.dot_dimension_numbers<[1], [0], [0], [1], [0, 0, 1, 1], [], []>} : vector<16x32xf32>, vector<32x32xf32>, vector<16x32xf32> -> vector<16x32xf32>
    %c0_4 = arith.constant 0 : index
    %c0_5 = arith.constant 0 : index
    %4 = vector.load %arg5[%c0_4, %c0_5] : memref<1x32xf32, #tpu.memory_space<vmem>>, vector<1x32xf32>
    %5 = vector.broadcast %4 : vector<1x32xf32> to vector<16x32xf32>
    %6 = arith.addf %3, %5 : vector<16x32xf32>
    %c0_6 = arith.constant 0 : index
    %c0_7 = arith.constant 0 : index
    %c0_8 = arith.constant 0 : index
    %7 = vector.load %arg6[%c0_6, %c0_7, %c0_8] : memref<1x1x32xf32, #tpu.memory_space<vmem>>, vector<1x1x32xf32>
    %8 = vector.shape_cast %7 : vector<1x1x32xf32> to vector<1x32xf32>
    %9 = vector.broadcast %8 : vector<1x32xf32> to vector<16x32xf32>
    %10 = arith.mulf %9, %6 : vector<16x32xf32>
    %c0_9 = arith.constant 0 : index
    %c0_10 = arith.constant 0 : index
    %c0_11 = arith.constant 0 : index
    %11 = vector.load %arg7[%c0_9, %c0_10, %c0_11] : memref<1x16x32xf32, #tpu.memory_space<vmem>>, vector<1x16x32xf32>
    %12 = vector.shape_cast %11 : vector<1x16x32xf32> to vector<16x32xf32>
    %13 = arith.addf %10, %12 : vector<16x32xf32>
    %c0_12 = arith.constant 0 : index
    %c0_13 = arith.constant 0 : index
    %c0_14 = arith.constant 0 : index
    %14 = vector.load %arg8[%c0_12, %c0_13, %c0_14] : memref<1x16x32xf32, #tpu.memory_space<vmem>>, vector<1x16x32xf32>
    %15 = vector.shape_cast %14 : vector<1x16x32xf32> to vector<16x32xf32>
    %16 = vector.shape_cast %13 : vector<16x32xf32> to vector<1x16x32xf32>
    tpu.vector_store %arg8[%c0_12, %c0_13, %c0_14], %16 {strides = array<i32>} : memref<1x16x32xf32, #tpu.memory_space<vmem>>, vector<1x16x32xf32>,
    return
  }
  func.func @transform_0(%arg0: i32, %arg1: i32, %arg2: i32) -> (i32, i32, i32) {
    %c0_i32 = arith.constant 0 : i32
    %c0_i32_0 = arith.constant 0 : i32
    return %arg1, %arg2, %c0_i32 : i32, i32, i32
  }
  func.func @transform_1(%arg0: i32, %arg1: i32, %arg2: i32) -> (i32, i32) {
    %c0_i32 = arith.constant 0 : i32
    %c0_i32_0 = arith.constant 0 : i32
    return %c0_i32, %arg0 : i32, i32
  }
  func.func @transform_2(%arg0: i32, %arg1: i32, %arg2: i32) -> (i32, i32) {
    %c0_i32 = arith.constant 0 : i32
    %c0_i32_0 = arith.constant 0 : i32
    return %c0_i32, %arg0 : i32, i32
  }
  func.func @transform_3(%arg0: i32, %arg1: i32, %arg2: i32) -> (i32, i32, i32) {
    %c0_i32 = arith.constant 0 : i32
    %c0_i32_0 = arith.constant 0 : i32
    return %arg1, %c0_i32, %arg0 : i32, i32, i32
  }
  func.func @transform_4(%arg0: i32, %arg1: i32, %arg2: i32) -> (i32, i32, i32) {
    %c0_i32 = arith.constant 0 : i32
    return %arg1, %arg2, %arg0 : i32, i32, i32
  }
  func.func @transform_5(%arg0: i32, %arg1: i32, %arg2: i32) -> (i32, i32, i32) {
    %c0_i32 = arith.constant 0 : i32
    return %arg1, %arg2, %arg0 : i32, i32, i32
  }
}

</mosaic_0001>

<bundles_post_ra>
// kernel: tpu_custom_call.1
= control target key start
LH: loop header
LB: loop body
LE: loop exit
PB: predicated region body
PF: predicated region fallthrough
CT: control target
= control target key end

     0   :  { %10 = vsyncpa [#allocation3], 0  ;;  %s1228_s0 = inlined_call_operand.hbm [shape: f32[2,16,32], index: 0, kind: input, shape index: {}]   ;;  %s1229_s1 = inlined_call_operand.hbm [shape: f32[32,32], index: 1, kind: input, shape index: {}]   ;;  %s1230_s2 = inlined_call_operand.vmem [shape: f32[1,32], index: 2, kind: input, shape index: {}]   ;;  %s1231_s3 = inlined_call_operand.vmem [shape: f32[2,1,32], index: 3, kind: input, shape index: {}]   ;;  %s1232_s4 = inlined_call_operand.hbm [shape: f32[2,16,32], index: 4, kind: input, shape index: {}]   ;;  %s1233_s5 = inlined_call_operand.hbm [shape: f32[2,16,32], index: 5, kind: output, shape index: {}]  }
   0x1   :  { %12 = vsyncpa [#allocation3 + $0x1], 0 }
   0x2   :  { %13 = vsyncpa [#allocation6], 0 }
   0x3   :  { %14 = vsyncpa [#allocation4], 0 }
   0x4   :  { %16 = vsyncpa [#allocation4 + $0x1], 0  ;;  %s994_s18 = smov 0   ;;  %s996_s19 = smov 0  }
   0x5   :  { %s998_s20 = smov 0   ;;  %s1000_s21 = smov 0  }
   0x6   :  { %s1002_s22 = smov 0   ;;  %s1004_s23 = smov 0  }
   0x7 LB: > { %s37_s24 = sadd.s32 1, %s950_s22  ;;  %s50_s25 = sadd.s32 1, %s942_s20  ;;  %s954_s23 = sphi %s1004_s23, %s22_s23   ;;  %s950_s22 = sphi %s1002_s22, %s1252_s22   ;;  %s946_s21 = sphi %s1000_s21, %s1251_s21   ;;  %s942_s20 = sphi %s998_s20, %s1250_s20   ;;  %s938_s19 = sphi %s996_s19, %s1249_s19   ;;  %s934_s18 = sphi %s994_s18, %s1248_s18  }
   0x8   : > { %p39_p0 = scmp.ge.s32.totalorder %s37_s24, 2  ;;  %p57_p1 = scmp.ne.s32.totalorder %s942_s20, %s938_s19 }
   0x9   : > { %p58_p2 = scmp.eq.s32.totalorder %s954_s23, 0  ;;  %p728_p6 = scmp.lt.s32.totalorder %s954_s23, 2 }
   0xa   : > { %s1254_s24 = smov (%p39_p0, %s37_s24), 0  ;;  %s248_s28 = sand.u32 1, %s954_s23  }
   0xb   : > { %p1034_p3 = por %p58_p2, %p57_p1  ;;  %s45_s27 = ssub.s32 %s950_s22, %s1254_s24 }
   0xc   : > { %p48_p5 = scmp.eq.s32.totalorder %s45_s27, 0  ;;  %s250_s29 = sand.u32 1, %s942_s20  }
   0xd   : > { %s1047_s6 = sshll.u32 %s250_s29, 4  ;;  %s682_s7 = sshll.u32 %s950_s22, 8 }
   0xe   : > { %s1045_s30 = scalar_select %p48_p5, %s942_s20, %s50_s25  }
   0xf   : > { %s260_s10 = scalar_lea.hbm %s1228_s0, %s682_s7  ;;  %s252_s11 = scalar_lea.vmem [#allocation2], %s1047_s6 }
  0x10   : > { %s261_s12 = sshll.u32 %s252_s11, 4  ;;  %p1056_p7 = pnand %p728_p6, %p1034_p3  ;;  %s262_s12 = int_to_ptr.vmem [resolvable:$true] %s261_s12 }
  0x11   : > { %s1063_s16 = scalar_lea.hbm %s1232_s4, %s682_s7  ;;  %s1065_s17 = scalar_lea.sflag [#allocation3], %s248_s28 }
  0x12   : > { %p786_p8 = pneg %p1056_p7  ;;  %s797_s25 = scalar_lea.vmem %s262_s12, 256 }
  0x13   : > { %p798_p9 = scmp.ne.s32.totalorder %s262_s12, %s797_s25  ;;  %s956_s26 = smov [#allocation2]  }
  0x14   : > { %s802_s27 = sshll.u32 %s956_s26, 4  ;;  %s803_s27 = int_to_ptr.vmem [resolvable:$false] %s802_s27 }
  0x15   : > { %p800_p10 = pnand %p798_p9, %p786_p8  ;;  %s804_s29 = scalar_lea.vmem %s803_s27, 512 }
  0x16   : > { %p805_p12 = scmp.lt.s32.totalorder %s262_s12, %s803_s27  ;;  %p806_p13 = scmp.lt.s32.totalorder %s804_s29, %s797_s25 }
  0x17   : > { %p801_p11 = pneg %p800_p10 }
  0x18   : > { %p807_p0 = por %p806_p13, %p805_p12 }
  0x1a   : > { %p808_p2 = pnand %p807_p0, %p801_p11 }
  0x1c   : > { %811 = shalt.err (!%p808_p2)
}
  0x1d   : > { %s957_s7 = smov 128   ;;  %s958_s28 = smov 8  }
  0x1e   : > { %719 = dma.hbm_to_vmem [thread:$0]  (!%p1056_p7), %s260_s10, 256, %s262_s12, %s1065_s17, %s957_s7, %s957_s7, %s958_s28  }
  0x1f   : > { %s284_s8 = scalar_lea.vmem [#allocation7], %s1047_s6  ;;  %s1080_s11 = sadd.s32 4294967295, %s954_s23  }
  0x20   : > { %s294_s9 = sshll.u32 %s284_s8, 4  ;;  %s657_s14 = sadd.s32 4294967294, %s954_s23   ;;  %s295_s9 = int_to_ptr.vmem [resolvable:$true] %s294_s9 }
  0x21   : > { %p63_p3 = scmp.ne.s32.totalorder %s938_s19, %s934_s18  ;;  %p1234_p5 = scmp.eq.s32.totalorder %s1080_s11, 0 }
  0x22   : > { %p201_p6 = scmp.eq.s32.totalorder %s1080_s11, 1  ;;  %p207_p9 = scmp.eq.s32.totalorder %s657_s14, 1 }
  0x23   : > { %p658_p10 = scmp.ge.s32.totalorder %s954_s23, 1  ;;  %p1090_p11 = por %p1234_p5, %p63_p3 }
  0x24   : > { %p1097_p12 = por %p201_p6, %p57_p1  ;;  %p1101_p13 = por %p207_p9, %p63_p3 }
  0x25   : > { %p214_p0 = scmp.lt.s32.totalorder %s954_s23, 3  ;;  %s959_s25 = smov [#allocation5]  }
  0x26   : > { %s1239_s6 = scalar_select %p1097_p12, 1, 0 }
  0x27   : > { %s1240_s10 = scalar_select %p1101_p13, 1, 0 }
  0x28   : > { %p1106_p2 = pnand %p658_p10, %p214_p0  ;;  %s228_s26 = sshll.u32 %s959_s25, 4  ;;  %s229_s26 = int_to_ptr.vmem [resolvable:$true] %s228_s26 }
  0x29   : > { %s825_s27 = scalar_lea.vmem %s295_s9, 256  ;;  %s960_s29 = smov [#allocation7]  }
  0x2a   : > { %p712_p4 = pneg %p1106_p2  ;;  %p826_p1 = scmp.ne.s32.totalorder %s295_s9, %s825_s27 }
  0x2b   : > { %s830_s8 = sshll.u32 %s960_s29, 4  ;;  %s831_s8 = int_to_ptr.vmem [resolvable:$false] %s830_s8 }
  0x2c   : > { %p828_p6 = pnand %p826_p1, %p786_p8  ;;  %s832_s14 = scalar_lea.vmem %s831_s8, 512 }
  0x2d   : > { %p833_p9 = scmp.lt.s32.totalorder %s295_s9, %s831_s8  ;;  %p834_p10 = scmp.lt.s32.totalorder %s832_s14, %s825_s27 }
  0x2e   : > { %p829_p3 = pneg %p828_p6 }
  0x2f   : > { %p835_p0 = por %p834_p10, %p833_p9 }
  0x31   : > { %p836_p5 = pnand %p835_p0, %p829_p3 }
  0x33   : > { %839 = shalt.err (!%p836_p5)
}
  0x34   : > { %722 = dma.hbm_to_vmem [thread:$0]  (!%p1056_p7), %s1063_s16, 256, %s295_s9, %s1065_s17, %s957_s7, %s957_s7, %s958_s28  }
  0x35   : > { %p1242_p8 = scmp.eq.s32.totalorder %s1080_s11, 0  ;;  %s851_s25 = scalar_lea.vmem %s229_s26, 512 }
  0x36   : > { %p852_p9 = scmp.ne.s32.totalorder %s229_s26, %s851_s25  ;;  %p859_p10 = scmp.lt.s32.totalorder %s229_s26, %s229_s26 }
  0x37   : > { %p713_p1 = pnand %p712_p4, %p1242_p8  ;;  %p860_p0 = scmp.lt.s32.totalorder %s851_s25, %s851_s25 }
  0x39   : > { %p842_p6 = pneg %p713_p1  ;;  %p861_p13 = por %p860_p0, %p859_p10 }
  0x3b   : > { %p854_p3 = pnand %p852_p9, %p842_p6 }
  0x3d   : > { %p855_p5 = pneg %p854_p3 }
  0x3f   : > { %p862_p12 = pnand %p861_p13, %p855_p5 }
  0x41   : > { %865 = shalt.err (!%p862_p12)
}
  0x42   : > { %715 = dma.hbm_to_vmem [thread:$0]  (!%p713_p1), %s1229_s1, 512, %s229_s26, [#allocation6], %s957_s7, %s957_s7, %s958_s28  }
  0x43   : > { %306 = sbr.rel (%p1106_p2) target bundleno = 303 (0x12f), region = 40  ;;  %s308_s17 = sand.u32 (!%p1106_p2), 1, %s1080_s11  }
  0x44   : > { %s310_s9 = sand.u32 (!%p1106_p2), 1, %s938_s19   ;;  %s309_s29 = scalar_lea.sflag (!%p1106_p2), [#allocation3], %s308_s17 }
  0x45   : > { %s1139_s27 = sshll.u32 (!%p1106_p2), %s310_s9, 4 }
  0x46   : > { %s312_s8 = scalar_lea.vmem (!%p1106_p2), [#allocation2], %s1139_s27 }
  0x48   : > { %917 = dma.done.wait (%p1090_p11), %s309_s29, 256  }
  0x49   : > { %919 = vsyncadd (%p1090_p11), %s309_s29, 4294967040  ;;  %p1243_p4 = scmp.eq.s32.totalorder %s1080_s11, 0 }
  0x4b   : > { %921 = dma.done.wait (%p1243_p4), [#allocation6], 512   ;;  %p1244_p7 = pmov %p1243_p4 }
  0x4c   : > { %s325_s7 = scalar_lea.vmem [#allocation7], %s1139_s27 }
  0x4d   : > { %923 = vsyncadd (%p1244_p7), [#allocation6], 4294966784 }
  0x4e   : > { %925 = dma.done.wait (%p1090_p11), %s309_s29, 256  }
  0x4f   : > { %927 = vsyncadd (%p1090_p11), %s309_s29, 4294967040  ;;  %vm391_vm0 = vcmask 261120   ;;  %v383_v0 = vld [vmem:[#allocation5 + $0x18] sm:$0xff]  ;;  %v382_v1 = vld [vmem:[#allocation5 + $0x10] sm:$0xff]  ;;  %p370_p11 = scmp.lt.s32.totalorder %s946_s21, 1  ;;  %s684_s25 = sshll.u32 %s946_s21, 8 }
  0x50   : > { %691 = vmatprep.subr.mxu0 %v383_v0  ;;  %v378_v2 = vld [vmem:[%s312_s8] sm:$0xff]  ;;  %v381_v3 = vld [vmem:[#allocation5 + $0x8] sm:$0xff]  ;;  %s365_s13 = scalar_lea.vmem [#allocation8], %s1139_s27  ;;  %p1245_p13 = scmp.ne.s32.totalorder %s1239_s6, 0 }
  0x51   : > { %692 = vmatpush3.msra.mxu0 %v383_v0  ;;  %699 = vmatprep.mubr.msk.f32.mxu0 %vm391_vm0, %v378_v2  ;;  %v380_v4 = vld [vmem:[#allocation5] sm:$0xff]  ;;  %v379_v5 = vld [vmem:[%s312_s8 + $0x8] sm:$0xff]  ;;  %s371_s28 = scalar_select %p370_p11, %s946_s21, 1 }
  0x52   : > { %693 = vmatprep.subr.mxu0 %v382_v1  ;;  %v673_v6 = vld [vmem:[%s1230_s2] ss:$0 sm:$0xff]  ;;  %v483_v10 = vld [vmem:[%s325_s7 + $0x8] sm:$0xff]  ;;  %s505_s16 = sshll.u32 %s365_s13, 4  ;;  %s1174_s8 = scalar_lea.hbm %s1233_s5, %s684_s25  ;;  %s1176_s16 = int_to_ptr.vmem [resolvable:$true] %s505_s16 }
  0x53   : > { %694 = vmatpush3.msra.mxu0 %v382_v1  ;;  %s375_s12 = scalar_lea.vmem %s1231_s3, %s371_s28  ;;  %v482_v14 = vld [vmem:[%s325_s7] sm:$0xff]  ;;  %s1182_s21 = scalar_lea.sflag [#allocation4], %s310_s9 }
  0x54   : > { %695 = vmatprep.subr.mxu0 %v381_v3  ;;  %v676_v8 = vld [vmem:[%s375_s12] ss:$0 sm:$0xff]  ;;  %s866_s27 = scalar_lea.vmem %s1176_s16, 256  ;;  %s961_s7 = smov [#allocation8]  }
  0x55   : > { %696 = vmatpush3.msra.mxu0 %v381_v3  ;;  %p867_p12 = scmp.ne.s32.totalorder %s1176_s16, %s866_s27  ;;  %s870_s28 = sshll.u32 %s961_s7, 4  ;;  %s871_s28 = int_to_ptr.vmem [resolvable:$false] %s870_s28 }
  0x56   : > { %697 = vmatprep.subr.mxu0 %v380_v4  ;;  %s872_s11 = scalar_lea.vmem %s871_s28, 512  ;;  %p873_p1 = scmp.lt.s32.totalorder %s1176_s16, %s871_s28 }
  0x57   : > { %698 = vmatpush3.msra.mxu0 %v380_v4  ;;  %p868_p2 = pnand %p867_p12, %p1245_p13  ;;  %p874_p6 = scmp.lt.s32.totalorder %s872_s11, %s866_s27 }
  0x58   : > { %700 = vmatmul.mubr.msk.f32.vlgmr.msra.gmra.mxu0 %vm391_vm0, %v379_v5 }
  0x59   : > { %p869_p8 = pneg %p868_p2  ;;  %p875_p9 = por %p874_p6, %p873_p1 }
  0x5b   : > { %p876_p3 = pnand %p875_p9, %p869_p8 }
 0x118   : > { %v701_v7 = vpop.f32.mrf.mxu0 }
 0x119   : > { %v470_v9 = vadd.f32 %v701_v7, %v673_v6 }
 0x11a   : > { %v464_v11 = vpop.f32.mrf.mxu0 }
 0x11b   : > { %v481_v12 = vmul.f32 %v676_v8, %v470_v9  ;;  %v465_v13 = vadd.f32 %v673_v6, %v464_v11 }
 0x11d   : > { %v485_v15 = vadd.f32 %v483_v10, %v481_v12  ;;  %v480_v16 = vmul.f32 %v676_v8, %v465_v13 }
 0x11f   : > { %487 = vst.msk [vmem:[%s365_s13 + $0x8] sm:$0xff] %vm391_vm0, %v485_v15  ;;  %v484_v17 = vadd.f32 %v482_v14, %v480_v16 }
 0x121   : > { %486 = vst.msk [vmem:[%s365_s13] sm:$0xff] %vm391_vm0, %v484_v17 }
 0x122   : > { %879 = shalt.err (!%p876_p3)
}
 0x123   : > { %s880_s9 = scalar_lea.hbm %s1174_s8, 256  ;;  %s884_s26 = scalar_lea.hbm %s1233_s5, 512 }
 0x124   : > { %p881_p5 = scmp.ne.s32.totalorder %s1174_s8, %s880_s9  ;;  %p885_p4 = scmp.lt.s32.totalorder %s1174_s8, %s1233_s5 }
 0x125   : > { %p886_p7 = scmp.lt.s32.totalorder %s884_s26, %s880_s9 }
 0x126   : > { %p882_p10 = pnand %p881_p5, %p1245_p13 }
 0x127   : > { %p887_p11 = por %p886_p7, %p885_p4 }
 0x128   : > { %p883_p0 = pneg %p882_p10 }
 0x12a   : > { %p888_p12 = pnand %p887_p11, %p883_p0 }
 0x12c   : > { %891 = shalt.err (!%p888_p12)
}
 0x12d   : > { %s962_s13 = smov 128   ;;  %s963_s17 = smov 8  }
 0x12e   : > { %710 = dma.vmem_to_hbm [thread:$0]  (%p1245_p13), %s1176_s16, 256, %s1174_s8, %s1182_s21, %s962_s13, %s962_s13, %s963_s17  }
 0x12f PF: > { %s520_s29 = sand.u32 1, %s934_s18   ;;  %p1246_p2 = scmp.ne.s32.totalorder %s1240_s10, 0 }
 0x130   : > { %p1247_p8 = scmp.ge.s32.totalorder %s954_s23, 2  ;;  %s521_s27 = scalar_lea.sflag [#allocation4], %s520_s29 }
 0x132   : > { %p724_p1 = pnand %p1247_p8, %p1246_p2 }
 0x134   : > { %p725_p6 = pneg %p724_p1 }
 0x136   : > { %929 = dma.done.wait (%p725_p6), %s521_s27, 256  }
 0x137   : > { %931 = vsyncadd (%p725_p6), %s521_s27, 4294967040  ;;  %s22_s23 = sadd.s32 1, %s954_s23   ;;  %s1248_s18 = smov %s938_s19 }
 0x138   : > { %p19_p9 = scmp.ge.s32.totalorder %s22_s23, 4   ;;  %s1249_s19 = smov %s942_s20 }
 0x139   : > { %s1250_s20 = smov %s1045_s30  ;;  %s1251_s21 = smov %s950_s22 }
 0x13a   : > { %s1252_s22 = smov %s1254_s24  ;;  %21 = sbr.rel (!%p19_p9) target bundleno = 7 (0x7), region = 107 }
 0x13f   :  { %526 = vsyncpa [#allocation3], 1 }
 0x140   :  { %528 = vsyncpa [#allocation3 + $0x1], 1 }
 0x141   :  { %529 = vsyncpa [#allocation6], 1 }
 0x142   :  { %530 = vsyncpa [#allocation4], 1 }
 0x143   :  { %532 = vsyncpa [#allocation4 + $0x1], 1 }

</bundles_post_ra>
